<compile_context>
chip_gen: v6e
topology: v6e:2x2x1
jax: 0.10.0
libtpu: 0.0.40
codegen_flags: <defaults>
</compile_context>

<pallas_src>
import functools
import math

import jax
import jax.numpy as jnp
from jax.experimental import pallas as pl
from jax.experimental.pallas import tpu as pltpu


def _rotate_group_kernel(*refs, channels, NB, mm_dtype):
    """Rotate all tensors of one (N, H, W) group for one (hw, n) grid step.

    refs = (wxT, wyT, x_0, ..., x_{T-1}, o_0, ..., o_{T-1})
      wxT:  (W, HW_tile)        column hat weights (mm_dtype)
      wyT:  (H, HW_tile)        row hat weights    (mm_dtype, upcast in-kernel)
      x_t:  (NB*C_t*H, W)       NB batch elements, all channels, rows stacked
      o_t:  (NB, C_t, HW_tile)  rotated pixels, lane-dense along HW_tile
    """
    n_t = len(channels)
    wxT_ref, wyT_ref = refs[0], refs[1]
    x_refs = refs[2:2 + n_t]
    o_refs = refs[2 + n_t:2 + 2 * n_t]

    H = wyT_ref.shape[0]
    wx = wxT_ref[...]                         # (W, HW_tile) MXU operand
    wy = wyT_ref[...].astype(jnp.float32)     # (H, HW_tile) f32 for the VPU stage

    for t, c in enumerate(channels):
        # In-kernel cast to the matmul dtype (no wrapper-side HBM cast pass).
        img = x_refs[t][...].astype(mm_dtype)                     # (NB*c*H, W)
        # u[(nb*c+ch)*H + p, k] = sum_q img[...] * w_x[q, k]      -- MXU
        u = jnp.dot(img, wx, preferred_element_type=jnp.float32)  # (NB*c*H, HW_tile)
        # out[nb, ch, k] = sum_p u[(nb*c+ch)*H + p, k] * w_y[p, k]
        # Per-row-block loop keeps the live temp at (H, HW_tile).
        for nb in range(NB):
            for ch in range(c):
                r0 = (nb * c + ch) * H
                row = jnp.sum(u[r0:r0 + H, :] * wy, axis=0)       # (HW_tile,)
                o_refs[t][nb, ch, :] = row.astype(o_refs[t].dtype)


def _make_rotation_weights(cos_sin, H, W, dtype):
    """Bilinear hat-weight matrices for rotating an (H, W) image.

    Returns (w_xT, w_yT) with shapes (W, H*W) and (H, H*W) such that
        rotated[i, j] = sum_{p,q} w_yT[p, i*W+j] * w_xT[q, i*W+j] * img[p, q].
    Out-of-image source coordinates get zero weight (zero fill).
    """
    c = cos_sin[0]
    s = cos_sin[1]
    cy = (H - 1) / 2.0
    cx = (W - 1) / 2.0
    dy = (jnp.arange(H, dtype=jnp.float32) - cy)[:, None]                # (H, 1)
    dx = (jnp.arange(W, dtype=jnp.float32) - cx)[None, :]                # (1, W)
    # Inverse map: output pixel (i, j) -> source coords (sy, sx); CCW-positive
    # rotation in y-down image coordinates about the ((H-1)/2, (W-1)/2) center.
    # TODO(synk): verify exact torchvision half-pixel/sign convention; the
    # +90-deg behaviour (out[i,j] = img[H-1-j, i]) is asserted in __main__.
    sx = (c * dx + s * dy + cx).reshape(1, H * W)                        # (1, HW)
    sy = (-s * dx + c * dy + cy).reshape(1, H * W)                       # (1, HW)
    p = jnp.arange(H, dtype=jnp.float32)[:, None]                        # (H, 1)
    q = jnp.arange(W, dtype=jnp.float32)[:, None]                        # (W, 1)
    w_yT = jnp.maximum(0.0, 1.0 - jnp.abs(sy - p)).astype(dtype)         # (H, HW)
    w_xT = jnp.maximum(0.0, 1.0 - jnp.abs(sx - q)).astype(dtype)         # (W, HW)
    return w_xT, w_yT


def _largest_divisor_at_most(n, cap):
    for d in range(min(n, cap), 0, -1):
        if n % d == 0:
            return d
    return 1


def _pick_hw_tile(HW, target):
    """Largest 128-aligned divisor of HW that is <= target (or HW if small)."""
    if HW <= target:
        return HW
    for t in range(target - target % 128, 127, -128):
        if HW % t == 0:
            return t
    # TODO(synk): pad HW to a multiple of 128 when no aligned divisor exists.
    return HW


def _rotate_group(tensors, w_xT, w_yT, *, N, H, W, use_bf16, hw_tile_target=4096):
    """Rotate a list of NCHW tensors sharing (N, H, W) with one pallas_call."""
    channels = tuple(int(t.shape[1]) for t in tensors)
    HW = H * W
    mm_dtype = jnp.bfloat16 if use_bf16 else jnp.float32

    # Batch several batch elements per grid step (fills MXU rows, fewer steps).
    NB = _largest_divisor_at_most(N, 8)
    if any((NB * c * H) % 8 != 0 for c in channels):
        NB = N   # fall back to full-extent row blocks to satisfy (8,128) tiling

    hw_tile = _pick_hw_tile(HW, hw_tile_target)
    grid = (HW // hw_tile, N // NB)   # n innermost: weight tiles stay resident

    # Weights: indexed only by the hw axis -> same block across the inner batch
    # loop, so Pallas does not re-DMA them per batch element.
    # TODO(synk): single-buffer these constant-index inputs (pl.Buffered(1) or
    # one-time DMA into scratch) to halve their VMEM footprint at 224x224.
    in_specs = [
        pl.BlockSpec((W, hw_tile), lambda hw, n: (0, hw)),
        pl.BlockSpec((H, hw_tile), lambda hw, n: (0, hw)),
    ]
    x2d = []
    for t, c in zip(tensors, channels):
        x2d.append(t.reshape(N * c * H, W))          # free contiguous NCHW merge
        in_specs.append(pl.BlockSpec((NB * c * H, W), lambda hw, n: (n, 0)))

    out_shape = tuple(jax.ShapeDtypeStruct((N, c, HW), t.dtype)
                      for t, c in zip(tensors, channels))
    out_specs = [pl.BlockSpec((NB, c, hw_tile), lambda hw, n: (n, 0, hw))
                 for c in channels]

    # Explicit VMEM budget (scoped defaults: 16 MiB v5e, 32 MiB v6e/v7x).
    c_tot = sum(channels)
    w_bytes = jnp.dtype(mm_dtype).itemsize
    x_bytes = max(jnp.dtype(t.dtype).itemsize for t in tensors)
    est = (2 * (W + H) * hw_tile * w_bytes          # double-buffered weight tiles
           + 2 * NB * c_tot * H * W * x_bytes       # double-buffered input tiles
           + 2 * NB * c_tot * hw_tile * 4           # double-buffered output tiles
           + NB * c_tot * H * hw_tile * 4           # f32 MXU result u
           + 8 * H * hw_tile * 4)                   # stage-2 temps / slack
    vmem_limit = int(min(64 * 2 ** 20, max(32 * 2 ** 20, 2 * est)))

    kernel = functools.partial(_rotate_group_kernel,
                               channels=channels, NB=NB, mm_dtype=mm_dtype)
    outs = pl.pallas_call(
        kernel,
        out_shape=out_shape,
        grid_spec=pltpu.PrefetchScalarGridSpec(
            num_scalar_prefetch=0,
            grid=grid,
            in_specs=in_specs,
            out_specs=out_specs,
        ),
        compiler_params=pltpu.CompilerParams(
            dimension_semantics=("parallel", "parallel"),
            vmem_limit_bytes=vmem_limit),
    )(w_xT, w_yT, *x2d)
    if not isinstance(outs, (tuple, list)):
        outs = (outs,)
    return [o.reshape(N, c, H, W) for o, c in zip(outs, channels)]


def rotate_images_nchw(x, cos_sin, *, use_bf16=True):
    """Rotate an NCHW batch by the angle encoded as cos_sin = [cos, sin]."""
    N, C, H, W = x.shape
    mm_dtype = jnp.bfloat16 if use_bf16 else jnp.float32
    w_xT, w_yT = _make_rotation_weights(cos_sin, H, W, mm_dtype)
    return _rotate_group([x], w_xT, w_yT, N=N, H=H, W=W, use_bf16=use_bf16)[0]


def _rotate_dict(d, cos_sin, use_bf16):
    """Rotate every NCHW tensor in `d`; tensors sharing (N, H, W) are fused
    into one pallas_call (separate inputs, no wrapper-side concatenation)."""
    # TODO(synk): integer label/mask tensors get the same bilinear + bf16
    # treatment as images; gate use_bf16 / interpolation per tensor if needed.
    mm_dtype = jnp.bfloat16 if use_bf16 else jnp.float32
    groups = {}
    for name, v in d.items():
        groups.setdefault((int(v.shape[0]), int(v.shape[2]), int(v.shape[3])),
                          []).append(name)
    wcache = {}
    out = {}
    for (N, H, W), names in groups.items():
        if (H, W) not in wcache:
            wcache[(H, W)] = _make_rotation_weights(cos_sin, H, W, mm_dtype)
        w_xT, w_yT = wcache[(H, W)]
        rots = _rotate_group([d[n] for n in names], w_xT, w_yT,
                             N=N, H=H, W=W, use_bf16=use_bf16)
        for n, r in zip(names, rots):
            out[n] = r
    return out


def random_rotate(inputs, key, angle_range, outputs=None, *, use_bf16=True):
    """JAX equivalent of RandomRotate.forward: one random angle for all tensors."""
    angle_deg = jax.random.uniform(
        key, (), minval=angle_range[0], maxval=angle_range[1], dtype=jnp.float32)
    theta = angle_deg * (math.pi / 180.0)
    cos_sin = jnp.stack([jnp.cos(theta), jnp.sin(theta)]).astype(jnp.float32)
    rot_in = _rotate_dict(inputs, cos_sin, use_bf16)
    if outputs is not None:
        rot_out = _rotate_dict(outputs, cos_sin, use_bf16)
        return rot_in, rot_out
    return rot_in


if __name__ == "__main__":
    key = jax.random.PRNGKey(0)
    k1, k2, k_angle = jax.random.split(key, 3)
    # Inputs dict of NCHW image tensors (small shapes).
    inputs = {
        "rgb":   jax.random.normal(k1, (2, 4, 16, 16), dtype=jnp.float32),
        "depth": jax.random.normal(k2, (2, 1, 16, 16), dtype=jnp.float32),
    }
    rotated = random_rotate(inputs, k_angle, angle_range=[-45.0, 45.0])
    for v in rotated.values():
        jax.block_until_ready(v)
    assert rotated["rgb"].shape == inputs["rgb"].shape
    assert rotated["depth"].shape == inputs["depth"].shape

    # Sanity 1: zero-angle rotation is the identity (f32 path, tight tol).
    ident = rotate_images_nchw(inputs["rgb"], jnp.array([1.0, 0.0], jnp.float32),
                               use_bf16=False)
    jax.block_until_ready(ident)
    assert jnp.allclose(ident, inputs["rgb"], atol=1e-5)

    # Sanity 2: +90 degrees is an exact gather; matches rot90 with our
    # CCW-positive, y-down convention (out[i, j] = img[H-1-j, i]).
    r90 = rotate_images_nchw(inputs["rgb"], jnp.array([0.0, 1.0], jnp.float32),
                             use_bf16=False)
    expected90 = jnp.rot90(inputs["rgb"], k=-1, axes=(2, 3))
    jax.block_until_ready(r90)
    assert jnp.allclose(r90, expected90, atol=1e-5)

    # Sanity 3: default bf16 MXU path tracks the f32 path within augmentation tol.
    cs = jnp.array([math.cos(0.3), math.sin(0.3)], jnp.float32)
    r32 = rotate_images_nchw(inputs["rgb"], cs, use_bf16=False)
    r16 = rotate_images_nchw(inputs["rgb"], cs, use_bf16=True)
    jax.block_until_ready((r32, r16))
    assert float(jnp.max(jnp.abs(r32 - r16))) < 0.15

    print("KERNEL_OK")
</pallas_src>

<mosaic_0001>
module attributes {stable_mosaic.version = 11 : i64} {
  func.func @_rotate_group_kernel(%arg0: i32, %arg1: i32, %arg2: memref<16x256xbf16, #tpu.memory_space<vmem>>, %arg3: memref<16x256xbf16, #tpu.memory_space<vmem>>, %arg4: memref<128x16xf32, #tpu.memory_space<vmem>>, %arg5: memref<32x16xf32, #tpu.memory_space<vmem>>, %arg6: memref<2x4x256xf32, #tpu.memory_space<vmem>>, %arg7: memref<2x1x256xf32, #tpu.memory_space<vmem>>) attributes {dimension_semantics = [#tpu.dimension_semantics<parallel>, #tpu.dimension_semantics<parallel>], iteration_bounds = array<i64: 1, 1>, scalar_prefetch = 0 : i64, scratch_operands = 0 : i64, tpu.core_type = #tpu.core_type<tc>, window_params = [{transform_indices = @transform_0, window_bounds = array<i64: 16, 256>}, {transform_indices = @transform_1, window_bounds = array<i64: 16, 256>}, {transform_indices = @transform_2, window_bounds = array<i64: 128, 16>}, {transform_indices = @transform_3, window_bounds = array<i64: 32, 16>}, {transform_indices = @transform_4, window_bounds = array<i64: 2, 4, 256>}, {transform_indices = @transform_5, window_bounds = array<i64: 2, 1, 256>}]} {
    %c0 = arith.constant 0 : index
    %c0_0 = arith.constant 0 : index
    %0 = vector.load %arg2[%c0, %c0_0] : memref<16x256xbf16, #tpu.memory_space<vmem>>, vector<16x256xbf16>
    %c0_1 = arith.constant 0 : index
    %c0_2 = arith.constant 0 : index
    %1 = vector.load %arg3[%c0_1, %c0_2] : memref<16x256xbf16, #tpu.memory_space<vmem>>, vector<16x256xbf16>
    %2 = arith.extf %1 : vector<16x256xbf16> to vector<16x256xf32>
    %c0_3 = arith.constant 0 : index
    %c0_4 = arith.constant 0 : index
    %3 = vector.load %arg4[%c0_3, %c0_4] : memref<128x16xf32, #tpu.memory_space<vmem>>, vector<128x16xf32>
    %4 = arith.truncf %3 : vector<128x16xf32> to vector<128x16xbf16>
    %cst = arith.constant dense<0.000000e+00> : vector<128x256xf32>
    %5 = tpu.matmul %4, %0, %cst {dimension_numbers = #tpu.dot_dimension_numbers<[1], [0], [0], [1], [0, 0, 1, 1], [], []>} : vector<128x16xbf16>, vector<16x256xbf16>, vector<128x256xf32> -> vector<128x256xf32>
    %6 = vector.extract_strided_slice %5 {offsets = [0, 0], sizes = [16, 256], strides = [1, 1]} : vector<128x256xf32> to vector<16x256xf32>
    %7 = arith.mulf %6, %2 : vector<16x256xf32>
    %cst_5 = arith.constant dense<0.000000e+00> : vector<256xf32>
    %8 = vector.multi_reduction <add>, %7, %cst_5 [0] : vector<16x256xf32> to vector<256xf32>
    %c0_6 = arith.constant 0 : index
    %c0_7 = arith.constant 0 : index
    %c0_8 = arith.constant 0 : index
    %9 = vector.load %arg6[%c0_6, %c0_7, %c0_8] : memref<2x4x256xf32, #tpu.memory_space<vmem>>, vector<1x1x256xf32>
    %10 = vector.shape_cast %9 : vector<1x1x256xf32> to vector<256xf32>
    %11 = vector.shape_cast %8 : vector<256xf32> to vector<1x1x256xf32>
    tpu.vector_store %arg6[%c0_6, %c0_7, %c0_8], %11 {strides = array<i32>} : memref<2x4x256xf32, #tpu.memory_space<vmem>>, vector<1x1x256xf32>,
    %12 = vector.extract_strided_slice %5 {offsets = [16, 0], sizes = [16, 256], strides = [1, 1]} : vector<128x256xf32> to vector<16x256xf32>
    %13 = arith.mulf %12, %2 : vector<16x256xf32>
    %cst_9 = arith.constant dense<0.000000e+00> : vector<256xf32>
    %14 = vector.multi_reduction <add>, %13, %cst_9 [0] : vector<16x256xf32> to vector<256xf32>
    %c0_10 = arith.constant 0 : index
    %c1 = arith.constant 1 : index
    %c0_11 = arith.constant 0 : index
    %15 = vector.load %arg6[%c0_10, %c1, %c0_11] : memref<2x4x256xf32, #tpu.memory_space<vmem>>, vector<1x1x256xf32>
    %16 = vector.shape_cast %15 : vector<1x1x256xf32> to vector<256xf32>
    %17 = vector.shape_cast %14 : vector<256xf32> to vector<1x1x256xf32>
    tpu.vector_store %arg6[%c0_10, %c1, %c0_11], %17 {strides = array<i32>} : memref<2x4x256xf32, #tpu.memory_space<vmem>>, vector<1x1x256xf32>,
    %18 = vector.extract_strided_slice %5 {offsets = [32, 0], sizes = [16, 256], strides = [1, 1]} : vector<128x256xf32> to vector<16x256xf32>
    %19 = arith.mulf %18, %2 : vector<16x256xf32>
    %cst_12 = arith.constant dense<0.000000e+00> : vector<256xf32>
    %20 = vector.multi_reduction <add>, %19, %cst_12 [0] : vector<16x256xf32> to vector<256xf32>
    %c0_13 = arith.constant 0 : index
    %c2 = arith.constant 2 : index
    %c0_14 = arith.constant 0 : index
    %21 = vector.load %arg6[%c0_13, %c2, %c0_14] : memref<2x4x256xf32, #tpu.memory_space<vmem>>, vector<1x1x256xf32>
    %22 = vector.shape_cast %21 : vector<1x1x256xf32> to vector<256xf32>
    %23 = vector.shape_cast %20 : vector<256xf32> to vector<1x1x256xf32>
    tpu.vector_store %arg6[%c0_13, %c2, %c0_14], %23 {strides = array<i32>} : memref<2x4x256xf32, #tpu.memory_space<vmem>>, vector<1x1x256xf32>,
    %24 = vector.extract_strided_slice %5 {offsets = [48, 0], sizes = [16, 256], strides = [1, 1]} : vector<128x256xf32> to vector<16x256xf32>
    %25 = arith.mulf %24, %2 : vector<16x256xf32>
    %cst_15 = arith.constant dense<0.000000e+00> : vector<256xf32>
    %26 = vector.multi_reduction <add>, %25, %cst_15 [0] : vector<16x256xf32> to vector<256xf32>
    %c0_16 = arith.constant 0 : index
    %c3 = arith.constant 3 : index
    %c0_17 = arith.constant 0 : index
    %27 = vector.load %arg6[%c0_16, %c3, %c0_17] : memref<2x4x256xf32, #tpu.memory_space<vmem>>, vector<1x1x256xf32>
    %28 = vector.shape_cast %27 : vector<1x1x256xf32> to vector<256xf32>
    %29 = vector.shape_cast %26 : vector<256xf32> to vector<1x1x256xf32>
    tpu.vector_store %arg6[%c0_16, %c3, %c0_17], %29 {strides = array<i32>} : memref<2x4x256xf32, #tpu.memory_space<vmem>>, vector<1x1x256xf32>,
    %30 = vector.extract_strided_slice %5 {offsets = [64, 0], sizes = [16, 256], strides = [1, 1]} : vector<128x256xf32> to vector<16x256xf32>
    %31 = arith.mulf %30, %2 : vector<16x256xf32>
    %cst_18 = arith.constant dense<0.000000e+00> : vector<256xf32>
    %32 = vector.multi_reduction <add>, %31, %cst_18 [0] : vector<16x256xf32> to vector<256xf32>
    %c1_19 = arith.constant 1 : index
    %c0_20 = arith.constant 0 : index
    %c0_21 = arith.constant 0 : index
    %33 = vector.load %arg6[%c1_19, %c0_20, %c0_21] : memref<2x4x256xf32, #tpu.memory_space<vmem>>, vector<1x1x256xf32>
    %34 = vector.shape_cast %33 : vector<1x1x256xf32> to vector<256xf32>
    %35 = vector.shape_cast %32 : vector<256xf32> to vector<1x1x256xf32>
    tpu.vector_store %arg6[%c1_19, %c0_20, %c0_21], %35 {strides = array<i32>} : memref<2x4x256xf32, #tpu.memory_space<vmem>>, vector<1x1x256xf32>,
    %36 = vector.extract_strided_slice %5 {offsets = [80, 0], sizes = [16, 256], strides = [1, 1]} : vector<128x256xf32> to vector<16x256xf32>
    %37 = arith.mulf %36, %2 : vector<16x256xf32>
    %cst_22 = arith.constant dense<0.000000e+00> : vector<256xf32>
    %38 = vector.multi_reduction <add>, %37, %cst_22 [0] : vector<16x256xf32> to vector<256xf32>
    %c1_23 = arith.constant 1 : index
    %c1_24 = arith.constant 1 : index
    %c0_25 = arith.constant 0 : index
    %39 = vector.load %arg6[%c1_23, %c1_24, %c0_25] : memref<2x4x256xf32, #tpu.memory_space<vmem>>, vector<1x1x256xf32>
    %40 = vector.shape_cast %39 : vector<1x1x256xf32> to vector<256xf32>
    %41 = vector.shape_cast %38 : vector<256xf32> to vector<1x1x256xf32>
    tpu.vector_store %arg6[%c1_23, %c1_24, %c0_25], %41 {strides = array<i32>} : memref<2x4x256xf32, #tpu.memory_space<vmem>>, vector<1x1x256xf32>,
    %42 = vector.extract_strided_slice %5 {offsets = [96, 0], sizes = [16, 256], strides = [1, 1]} : vector<128x256xf32> to vector<16x256xf32>
    %43 = arith.mulf %42, %2 : vector<16x256xf32>
    %cst_26 = arith.constant dense<0.000000e+00> : vector<256xf32>
    %44 = vector.multi_reduction <add>, %43, %cst_26 [0] : vector<16x256xf32> to vector<256xf32>
    %c1_27 = arith.constant 1 : index
    %c2_28 = arith.constant 2 : index
    %c0_29 = arith.constant 0 : index
    %45 = vector.load %arg6[%c1_27, %c2_28, %c0_29] : memref<2x4x256xf32, #tpu.memory_space<vmem>>, vector<1x1x256xf32>
    %46 = vector.shape_cast %45 : vector<1x1x256xf32> to vector<256xf32>
    %47 = vector.shape_cast %44 : vector<256xf32> to vector<1x1x256xf32>
    tpu.vector_store %arg6[%c1_27, %c2_28, %c0_29], %47 {strides = array<i32>} : memref<2x4x256xf32, #tpu.memory_space<vmem>>, vector<1x1x256xf32>,
    %48 = vector.extract_strided_slice %5 {offsets = [112, 0], sizes = [16, 256], strides = [1, 1]} : vector<128x256xf32> to vector<16x256xf32>
    %49 = arith.mulf %48, %2 : vector<16x256xf32>
    %cst_30 = arith.constant dense<0.000000e+00> : vector<256xf32>
    %50 = vector.multi_reduction <add>, %49, %cst_30 [0] : vector<16x256xf32> to vector<256xf32>
    %c1_31 = arith.constant 1 : index
    %c3_32 = arith.constant 3 : index
    %c0_33 = arith.constant 0 : index
    %51 = vector.load %arg6[%c1_31, %c3_32, %c0_33] : memref<2x4x256xf32, #tpu.memory_space<vmem>>, vector<1x1x256xf32>
    %52 = vector.shape_cast %51 : vector<1x1x256xf32> to vector<256xf32>
    %53 = vector.shape_cast %50 : vector<256xf32> to vector<1x1x256xf32>
    tpu.vector_store %arg6[%c1_31, %c3_32, %c0_33], %53 {strides = array<i32>} : memref<2x4x256xf32, #tpu.memory_space<vmem>>, vector<1x1x256xf32>,
    %c0_34 = arith.constant 0 : index
    %c0_35 = arith.constant 0 : index
    %54 = vector.load %arg5[%c0_34, %c0_35] : memref<32x16xf32, #tpu.memory_space<vmem>>, vector<32x16xf32>
    %55 = arith.truncf %54 : vector<32x16xf32> to vector<32x16xbf16>
    %cst_36 = arith.constant dense<0.000000e+00> : vector<32x256xf32>
    %56 = tpu.matmul %55, %0, %cst_36 {dimension_numbers = #tpu.dot_dimension_numbers<[1], [0], [0], [1], [0, 0, 1, 1], [], []>} : vector<32x16xbf16>, vector<16x256xbf16>, vector<32x256xf32> -> vector<32x256xf32>
    %57 = vector.extract_strided_slice %56 {offsets = [0, 0], sizes = [16, 256], strides = [1, 1]} : vector<32x256xf32> to vector<16x256xf32>
    %58 = arith.mulf %57, %2 : vector<16x256xf32>
    %cst_37 = arith.constant dense<0.000000e+00> : vector<256xf32>
    %59 = vector.multi_reduction <add>, %58, %cst_37 [0] : vector<16x256xf32> to vector<256xf32>
    %c0_38 = arith.constant 0 : index
    %c0_39 = arith.constant 0 : index
    %c0_40 = arith.constant 0 : index
    %60 = vector.load %arg7[%c0_38, %c0_39, %c0_40] : memref<2x1x256xf32, #tpu.memory_space<vmem>>, vector<1x1x256xf32>
    %61 = vector.shape_cast %60 : vector<1x1x256xf32> to vector<256xf32>
    %62 = vector.shape_cast %59 : vector<256xf32> to vector<1x1x256xf32>
    tpu.vector_store %arg7[%c0_38, %c0_39, %c0_40], %62 {strides = array<i32>} : memref<2x1x256xf32, #tpu.memory_space<vmem>>, vector<1x1x256xf32>,
    %63 = vector.extract_strided_slice %56 {offsets = [16, 0], sizes = [16, 256], strides = [1, 1]} : vector<32x256xf32> to vector<16x256xf32>
    %64 = arith.mulf %63, %2 : vector<16x256xf32>
    %cst_41 = arith.constant dense<0.000000e+00> : vector<256xf32>
    %65 = vector.multi_reduction <add>, %64, %cst_41 [0] : vector<16x256xf32> to vector<256xf32>
    %c1_42 = arith.constant 1 : index
    %c0_43 = arith.constant 0 : index
    %c0_44 = arith.constant 0 : index
    %66 = vector.load %arg7[%c1_42, %c0_43, %c0_44] : memref<2x1x256xf32, #tpu.memory_space<vmem>>, vector<1x1x256xf32>
    %67 = vector.shape_cast %66 : vector<1x1x256xf32> to vector<256xf32>
    %68 = vector.shape_cast %65 : vector<256xf32> to vector<1x1x256xf32>
    tpu.vector_store %arg7[%c1_42, %c0_43, %c0_44], %68 {strides = array<i32>} : memref<2x1x256xf32, #tpu.memory_space<vmem>>, vector<1x1x256xf32>,
    return
  }
  func.func @transform_0(%arg0: i32, %arg1: i32) -> (i32, i32) {
    %c0_i32 = arith.constant 0 : i32
    %c0_i32_0 = arith.constant 0 : i32
    return %c0_i32, %arg0 : i32, i32
  }
  func.func @transform_1(%arg0: i32, %arg1: i32) -> (i32, i32) {
    %c0_i32 = arith.constant 0 : i32
    %c0_i32_0 = arith.constant 0 : i32
    return %c0_i32, %arg0 : i32, i32
  }
  func.func @transform_2(%arg0: i32, %arg1: i32) -> (i32, i32) {
    %c0_i32 = arith.constant 0 : i32
    %c0_i32_0 = arith.constant 0 : i32
    return %arg1, %c0_i32 : i32, i32
  }
  func.func @transform_3(%arg0: i32, %arg1: i32) -> (i32, i32) {
    %c0_i32 = arith.constant 0 : i32
    %c0_i32_0 = arith.constant 0 : i32
    return %arg1, %c0_i32 : i32, i32
  }
  func.func @transform_4(%arg0: i32, %arg1: i32) -> (i32, i32, i32) {
    %c0_i32 = arith.constant 0 : i32
    %c0_i32_0 = arith.constant 0 : i32
    return %arg1, %c0_i32, %arg0 : i32, i32, i32
  }
  func.func @transform_5(%arg0: i32, %arg1: i32) -> (i32, i32, i32) {
    %c0_i32 = arith.constant 0 : i32
    %c0_i32_0 = arith.constant 0 : i32
    return %arg1, %c0_i32, %arg0 : i32, i32, i32
  }
}

</mosaic_0001>

<bundles_post_ra>
// kernel: tpu_custom_call.1
= control target key start
LH: loop header
LB: loop body
LE: loop exit
PB: predicated region body
PF: predicated region fallthrough
CT: control target
= control target key end

     0   :  { %11 = vsyncpa [#allocation3], 0  ;;  %v753_v2 = vmov 0   ;;  %vm64_vm0 = vcmask 130048   ;;  %s973_s0 = inlined_call_operand.vmem [shape: bf16[16,256], index: 0, kind: input, shape index: {}]   ;;  %s974_s1 = inlined_call_operand.vmem [shape: bf16[16,256], index: 1, kind: input, shape index: {}]   ;;  %s975_s2 = inlined_call_operand.vmem [shape: f32[128,16], index: 2, kind: input, shape index: {}]   ;;  %s976_s3 = inlined_call_operand.vmem [shape: f32[32,16], index: 3, kind: input, shape index: {}]   ;;  %s977_s4 = inlined_call_operand.hbm [shape: f32[2,4,256], index: 4, kind: output, shape index: {0}]   ;;  %s978_s5 = inlined_call_operand.hbm [shape: f32[2,1,256], index: 5, kind: output, shape index: {1}]  }
   0x1   :  { %v706_v0 = vld [vmem:[%s973_s0 + $0x4] ss:$8 sps:$4 sm:$0xff]   ;;  %v708_v1 = vld [vmem:[%s973_s0] ss:$8 sps:$4 sm:$0xff]   ;;  %121 = vmatprep.mubr.bf16.mxu0 %v753_v2  ;;  %171 = vmatprep.mubr.bf16.mxu1 %v753_v2  ;;  %v40_v6 = vld [vmem:[%s975_s2 + $0x50] sm:$0xff] }
   0x2   :  { %v30_v3 = vld [vmem:[%s975_s2] sm:$0xff]  ;;  %v31_v4 = vld [vmem:[%s975_s2 + $0x8] sm:$0xff]  ;;  %103 = vmatprep.subr.bf16.mxu0 %v706_v0  ;;  %696 = vmatprep.subr.bf16.mxu1 %v706_v0  ;;  %v41_v7 = vld [vmem:[%s975_s2 + $0x58] sm:$0xff] }
   0x3   :  { %v46_v5 = vpack.c.bf16 %v31_v4, %v30_v3  ;;  %104 = vmatpush1.bf16.msra.mxu0 %v708_v1  ;;  %697 = vmatpush1.bf16.msra.mxu1 %v708_v1  ;;  %v51_v8 = vpack.c.bf16 %v41_v7, %v40_v6  ;;  %v32_v9 = vld [vmem:[%s975_s2 + $0x10] sm:$0xff]  ;;  %v33_v10 = vld [vmem:[%s975_s2 + $0x18] sm:$0xff]  ;;  %v42_v11 = vld [vmem:[%s975_s2 + $0x60] sm:$0xff] }
   0x4   :  { %535 = vmatprep.subr.bf16.mxu1 %v706_v0  ;;  %v43_v12 = vld [vmem:[%s975_s2 + $0x68] sm:$0xff] }
   0x6   :  { %686 = vmatmul.mubr.msk.bf16.vlgmr.msra.gmra.mxu0 %vm64_vm0, %v46_v5  ;;  %691 = vmatmul.mubr.msk.bf16.vlgmr.msra.gmra.mxu1 %vm64_vm0, %v51_v8 }
   0x7   :  { %536 = vmatpush1.bf16.msra.mxu1 %v708_v1  ;;  %131 = vmatprep.mubr.bf16.mxu0 %v753_v2 }
   0x8   :  { %181 = vmatprep.mubr.bf16.mxu1 %v753_v2 }
   0x9   :  { %12 = vsyncpa [#allocation5], 0  ;;  %v47_v13 = vpack.c.bf16 %v33_v10, %v32_v9  ;;  %v52_v14 = vpack.c.bf16 %v43_v12, %v42_v11  ;;  %v34_v15 = vld [vmem:[%s975_s2 + $0x20] sm:$0xff]  ;;  %v35_v16 = vld [vmem:[%s975_s2 + $0x28] sm:$0xff]  ;;  %v754_v45 = vmov 1966171168   ;;  %v226_v47 = vlaneseq }
   0xa   :  { %v44_v17 = vld [vmem:[%s975_s2 + $0x70] sm:$0xff]  ;;  %v45_v18 = vld [vmem:[%s975_s2 + $0x78] sm:$0xff]  ;;  %v48_v19 = vpack.c.bf16 %v35_v16, %v34_v15  ;;  %v509_v23 = vld [vmem:[%s976_s3] sm:$0xff]  ;;  %v224_v46 = vunpack.c.l.s4 %v754_v45  ;;  %s756_s13 = smov [#allocation4]  }
   0xb   :  { %v53_v20 = vpack.c.bf16 %v45_v18, %v44_v17  ;;  %v36_v21 = vld [vmem:[%s975_s2 + $0x30] sm:$0xff]  ;;  %v37_v22 = vld [vmem:[%s975_s2 + $0x38] sm:$0xff]  ;;  %v510_v24 = vld [vmem:[%s976_s3 + $0x8] sm:$0xff]  ;;  %v227_v61 = vshrl.u32 %v226_v47, 7  ;;  %vm899_vm1 = vcmp.lt.s32.totalorder %v226_v47, 256  ;;  %s666_s14 = sshll.u32 %s756_s13, 4  ;;  %s667_s14 = int_to_ptr.vmem [resolvable:$true] %s666_s14 }
   0xc   :  { %v49_v25 = vpack.c.bf16 %v37_v22, %v36_v21  ;;  %v513_v26 = vpack.c.bf16 %v510_v24, %v509_v23  ;;  %v38_v27 = vld [vmem:[%s975_s2 + $0x40] sm:$0xff]  ;;  %v39_v28 = vld [vmem:[%s975_s2 + $0x48] sm:$0xff]  ;;  %v511_v29 = vld [vmem:[%s976_s3 + $0x10] sm:$0xff]  ;;  %v225_v60 = vunpack.c.0.s8 %v224_v46 }
   0xd   :  { %v512_v30 = vld [vmem:[%s976_s3 + $0x18] sm:$0xff]  ;;  %v50_v31 = vpack.c.bf16 %v39_v28, %v38_v27  ;;  %v24_v33 = vld [vmem:[%s974_s1] sm:$0xff]  ;;  %v25_v34 = vld [vmem:[%s974_s1 + $0x8] sm:$0xff]  ;;  %s755_s1 = smov [#allocation2]  }
   0xe   :  { %687 = vmatmul.mubr.msk.bf16.gmra.mxu0 %vm64_vm0, %v47_v13  ;;  %692 = vmatmul.mubr.msk.bf16.gmra.mxu1 %vm64_vm0, %v52_v14  ;;  %v514_v32 = vpack.c.bf16 %v512_v30, %v511_v29  ;;  %v873_v37 = vunpack.c.l.bf16 %v24_v33  ;;  %v875_v38 = vunpack.c.l.bf16 %v25_v34  ;;  %v877_v39 = vunpack.c.h.bf16 %v24_v33  ;;  %s654_s3 = sshll.u32 %s755_s1, 4  ;;  %s655_s3 = int_to_ptr.vmem [resolvable:$true] %s654_s3 }
   0xf   :  { %141 = vmatprep.mubr.bf16.mxu0 %v753_v2  ;;  %191 = vmatprep.mubr.bf16.mxu1 %v753_v2  ;;  %v879_v42 = vunpack.c.h.bf16 %v25_v34  ;;  %v889_v10 = vsub.s32 %v225_v60, %v227_v61  ;;  %s709_s15 = scalar_lea.vmem %s655_s3, 256  ;;  %p714_p1 = scmp.lt.s32.totalorder %s655_s3, %s655_s3 }
  0x10   :  { %p710_p0 = scmp.ne.s32.totalorder %s655_s3, %s709_s15  ;;  %p715_p2 = scmp.lt.s32.totalorder %s709_s15, %s709_s15 }
  0x12   :  { %p716_p3 = por %p715_p2, %p714_p1 }
  0x14   :  { %p717_p4 = pnand %p716_p3, %p710_p0 }
  0x16   :  { %688 = vmatmul.mubr.msk.bf16.gmra.mxu0 %vm64_vm0, %v48_v19  ;;  %693 = vmatmul.mubr.msk.bf16.gmra.mxu1 %vm64_vm0, %v53_v20 }
  0x17   :  { %151 = vmatprep.mubr.bf16.mxu0 %v753_v2  ;;  %553 = vmatprep.mubr.bf16.mxu1 %v753_v2 }
  0x1e   :  { %689 = vmatmul.mubr.msk.bf16.gmra.mxu0 %vm64_vm0, %v49_v25  ;;  %694 = vmatmul.mubr.msk.bf16.vlgmr.msra.gmra.mxu1 %vm64_vm0, %v513_v26 }
  0x1f   :  { %161 = vmatprep.mubr.bf16.mxu0 %v753_v2  ;;  %563 = vmatprep.mubr.bf16.mxu1 %v753_v2 }
  0x26   :  { %690 = vmatmul.mubr.msk.bf16.gmra.mxu0 %vm64_vm0, %v50_v31  ;;  %695 = vmatmul.mubr.msk.bf16.gmra.mxu1 %vm64_vm0, %v514_v32 }
  0xc6   :  { %v123_v35 = vpop.f32.mrf.mxu0  ;;  %v173_v36 = vpop.f32.mrf.mxu1 }
  0xc7   :  { %v202_v48 = vmul.f32 %v123_v35, %v873_v37  ;;  %v395_v49 = vmul.f32 %v173_v36, %v873_v37 }
  0xc8   :  { %v125_v40 = vpop.f32.mrf.mxu0  ;;  %v175_v41 = vpop.f32.mrf.mxu1 }
  0xc9   :  { %v203_v52 = vmul.f32 %v125_v40, %v877_v39  ;;  %v396_v53 = vmul.f32 %v175_v41, %v877_v39 }
  0xca   :  { %v127_v43 = vpop.f32.mrf.mxu0  ;;  %v177_v44 = vpop.f32.mrf.mxu1 }
  0xcb   :  { %v204_v50 = vmul.f32 %v127_v43, %v875_v38  ;;  %v397_v51 = vmul.f32 %v177_v44, %v875_v38 }
  0xcc   :  { %v129_v54 = vpop.f32.mrf.mxu0  ;;  %v179_v55 = vpop.f32.mrf.mxu1 }
  0xcd   :  { %v206_v56 = vadd.f32 %v204_v50, %v202_v48  ;;  %v399_v57 = vadd.f32 %v397_v51, %v395_v49  ;;  %v205_v58 = vmul.f32 %v129_v54, %v879_v42  ;;  %v398_v59 = vmul.f32 %v179_v55, %v879_v42 }
  0xce   :  { %v133_v62 = vpop.f32.mrf.mxu0  ;;  %v183_v63 = vpop.f32.mrf.mxu1 }
  0xcf   :  { %v207_v0 = vrot.slane %v206_v56, 4  ;;  %v400_v1 = vrot.slane %v399_v57, 4  ;;  %v213_v2 = vadd.f32 %v205_v58, %v203_v52  ;;  %v406_v3 = vadd.f32 %v398_v59, %v396_v53 }
  0xd0   :  { %v135_v4 = vpop.f32.mrf.mxu0  ;;  %v185_v5 = vpop.f32.mrf.mxu1  ;;  %v243_v11 = vmul.f32 %v133_v62, %v873_v37  ;;  %v433_v12 = vmul.f32 %v183_v63, %v873_v37 }
  0xd1   :  { %v208_v6 = vadd.f32 %v207_v0, %v206_v56  ;;  %v401_v7 = vadd.f32 %v400_v1, %v399_v57  ;;  %v214_v8 = vrot.slane %v213_v2, 4  ;;  %v407_v9 = vrot.slane %v406_v3, 4 }
  0xd2   :  { %v137_v13 = vpop.f32.mrf.mxu0  ;;  %v187_v14 = vpop.f32.mrf.mxu1  ;;  %v244_v19 = vmul.f32 %v135_v4, %v877_v39  ;;  %v434_v20 = vmul.f32 %v185_v5, %v877_v39 }
  0xd3   :  { %v209_v15 = vrot.slane %v208_v6, 2  ;;  %v402_v16 = vrot.slane %v401_v7, 2  ;;  %v215_v17 = vadd.f32 %v214_v8, %v213_v2  ;;  %v408_v18 = vadd.f32 %v407_v9, %v406_v3 }
  0xd4   :  { %v245_v21 = vmul.f32 %v137_v13, %v875_v38  ;;  %v435_v22 = vmul.f32 %v187_v14, %v875_v38  ;;  %v139_v23 = vpop.f32.mrf.mxu0  ;;  %v189_v24 = vpop.f32.mrf.mxu1 }
  0xd5   :  { %v210_v25 = vadd.f32 %v209_v15, %v208_v6  ;;  %v403_v26 = vadd.f32 %v402_v16, %v401_v7  ;;  %v216_v27 = vrot.slane %v215_v17, 2  ;;  %v409_v28 = vrot.slane %v408_v18, 2 }
  0xd6   :  { %v247_v29 = vadd.f32 %v245_v21, %v243_v11  ;;  %v437_v30 = vadd.f32 %v435_v22, %v433_v12  ;;  %v246_v31 = vmul.f32 %v139_v23, %v879_v42  ;;  %v436_v32 = vmul.f32 %v189_v24, %v879_v42  ;;  %v143_v33 = vpop.f32.mrf.mxu0  ;;  %v193_v34 = vpop.f32.mrf.mxu1 }
  0xd7   :  { %v211_v35 = vrot.slane %v210_v25, 1  ;;  %v404_v36 = vrot.slane %v403_v26, 1  ;;  %v217_v40 = vadd.f32 %v216_v27, %v215_v17  ;;  %v410_v41 = vadd.f32 %v409_v28, %v408_v18 }
  0xd8   :  { %v248_v44 = vrot.slane %v247_v29, 4  ;;  %v438_v45 = vrot.slane %v437_v30, 4  ;;  %v254_v46 = vadd.f32 %v246_v31, %v244_v19  ;;  %v444_v48 = vadd.f32 %v436_v32, %v434_v20  ;;  %v145_v49 = vpop.f32.mrf.mxu0  ;;  %v195_v50 = vpop.f32.mrf.mxu1 }
  0xd9   :  { %v212_v51 = vadd.f32 %v211_v35, %v210_v25  ;;  %v405_v52 = vadd.f32 %v404_v36, %v403_v26  ;;  %v218_v53 = vrot.slane %v217_v40, 1  ;;  %v411_v54 = vrot.slane %v410_v41, 1 }
  0xda   :  { %v249_v55 = vadd.f32 %v248_v44, %v247_v29  ;;  %v439_v56 = vadd.f32 %v438_v45, %v437_v30  ;;  %v255_v57 = vrot.slane %v254_v46, 4  ;;  %v445_v58 = vrot.slane %v444_v48, 4  ;;  %v147_v59 = vpop.f32.mrf.mxu0  ;;  %v197_v60 = vpop.f32.mrf.mxu1 }
  0xdb   :  { %v219_v47 = vadd.f32 %v218_v53, %v217_v40  ;;  %v412_v61 = vadd.f32 %v411_v54, %v410_v41  ;;  %v281_v62 = vmul.f32 %v143_v33, %v873_v37  ;;  %v471_v63 = vmul.f32 %v193_v34, %v873_v37 }
  0xdc   :  { %v250_v0 = vrot.slane %v249_v55, 2  ;;  %v440_v1 = vrot.slane %v439_v56, 2  ;;  %v256_v2 = vadd.f32 %v255_v57, %v254_v46  ;;  %v446_v3 = vadd.f32 %v445_v58, %v444_v48  ;;  %v149_v4 = vpop.f32.mrf.mxu0  ;;  %v199_v5 = vpop.f32.mrf.mxu1 }
  0xdd   :  { %v222_v6 = vcombine.low %v212_v51, %v219_v47  ;;  %v415_v7 = vcombine.low %v405_v52, %v412_v61  ;;  %v282_v8 = vmul.f32 %v145_v49, %v877_v39  ;;  %v472_v9 = vmul.f32 %v195_v50, %v877_v39 }
  0xde   :  { %v251_v11 = vadd.f32 %v250_v0, %v249_v55  ;;  %v441_v12 = vadd.f32 %v440_v1, %v439_v56  ;;  %v257_v13 = vrot.slane %v256_v2, 2  ;;  %v447_v14 = vrot.slane %v446_v3, 2  ;;  %v153_v15 = vpop.f32.mrf.mxu0  ;;  %v555_v16 = vpop.f32.mrf.mxu1 }
  0xdf   :  { %v229_v17 = vrot.slane %v222_v6, %v889_v10  ;;  %v422_v18 = vrot.slane %v415_v7, %v889_v10  ;;  %v283_v19 = vmul.f32 %v147_v59, %v875_v38  ;;  %v473_v20 = vmul.f32 %v197_v60, %v875_v38 }
  0xe0   :  { %v252_v21 = vrot.slane %v251_v11, 1  ;;  %v442_v22 = vrot.slane %v441_v12, 1  ;;  %v258_v23 = vadd.f32 %v257_v13, %v256_v2  ;;  %v448_v24 = vadd.f32 %v447_v14, %v446_v3  ;;  %v155_v25 = vpop.f32.mrf.mxu0  ;;  %v557_v26 = vpop.f32.mrf.mxu1 }
  0xe1   :  { %v236_v27 = vrot.slane %v229_v17, %v889_v10  ;;  %v429_v28 = vrot.slane %v422_v18, %v889_v10  ;;  %v285_v29 = vadd.f32 %v283_v19, %v281_v62  ;;  %v475_v30 = vadd.f32 %v473_v20, %v471_v63 }
  0xe2   :  { %v253_v31 = vadd.f32 %v252_v21, %v251_v11  ;;  %v443_v32 = vadd.f32 %v442_v22, %v441_v12  ;;  %v259_v33 = vrot.slane %v258_v23, 1  ;;  %v449_v34 = vrot.slane %v448_v24, 1  ;;  %v157_v35 = vpop.f32.mrf.mxu0  ;;  %v559_v36 = vpop.f32.mrf.mxu1 }
  0xe3   :  { %242 = vst.msk [vmem:[#allocation2] ss:$4 sm:$0x3] %vm899_vm1, %v236_v27  ;;  %432 = vst.msk [vmem:[#allocation2 + $0x9] ss:$4 sm:$0x3] %vm899_vm1, %v429_v28  ;;  %v284_v44 = vmul.f32 %v149_v4, %v879_v42  ;;  %v474_v45 = vmul.f32 %v199_v5, %v879_v42  ;;  %v319_v49 = vmul.f32 %v153_v15, %v873_v37 }
  0xe4   :  { %v286_v40 = vrot.slane %v285_v29, 4  ;;  %v476_v41 = vrot.slane %v475_v30, 4  ;;  %v260_v46 = vadd.f32 %v259_v33, %v258_v23  ;;  %v450_v48 = vadd.f32 %v449_v34, %v448_v24  ;;  %v159_v51 = vpop.f32.mrf.mxu0  ;;  %v561_v52 = vpop.f32.mrf.mxu1 }
  0xe5   :  { %v574_v50 = vmul.f32 %v555_v16, %v873_v37  ;;  %v292_v55 = vadd.f32 %v284_v44, %v282_v8  ;;  %v482_v56 = vadd.f32 %v474_v45, %v472_v9  ;;  %v320_v59 = vmul.f32 %v155_v25, %v877_v39 }
  0xe6   :  { %v287_v53 = vadd.f32 %v286_v40, %v285_v29  ;;  %v477_v54 = vadd.f32 %v476_v41, %v475_v30  ;;  %v263_v57 = vcombine.low %v253_v31, %v260_v46  ;;  %v453_v58 = vcombine.low %v443_v32, %v450_v48  ;;  %v163_v4 = vpop.f32.mrf.mxu0  ;;  %v565_v5 = vpop.f32.mrf.mxu1 }
  0xe7   :  { %v575_v60 = vmul.f32 %v557_v26, %v877_v39  ;;  %v293_v62 = vrot.slane %v292_v55, 4  ;;  %v483_v63 = vrot.slane %v482_v56, 4  ;;  %v321_v2 = vmul.f32 %v157_v35, %v875_v38 }
  0xe8   :  { %v288_v47 = vrot.slane %v287_v53, 2  ;;  %v478_v61 = vrot.slane %v477_v54, 2  ;;  %v270_v0 = vrot.slane %v263_v57, %v889_v10  ;;  %v460_v1 = vrot.slane %v453_v58, %v889_v10  ;;  %v165_v23 = vpop.f32.mrf.mxu0  ;;  %v567_v24 = vpop.f32.mrf.mxu1 }
  0xe9   :  { %v576_v3 = vmul.f32 %v559_v36, %v875_v38  ;;  %v294_v8 = vadd.f32 %v293_v62, %v292_v55  ;;  %v484_v9 = vadd.f32 %v483_v63, %v482_v56  ;;  %v323_v13 = vadd.f32 %v321_v2, %v319_v49 }
  0xea   :  { %v289_v6 = vadd.f32 %v288_v47, %v287_v53  ;;  %v479_v7 = vadd.f32 %v478_v61, %v477_v54  ;;  %v277_v11 = vrot.slane %v270_v0, %v889_v10  ;;  %v467_v12 = vrot.slane %v460_v1, %v889_v10  ;;  %v167_v44 = vpop.f32.mrf.mxu0  ;;  %v569_v45 = vpop.f32.mrf.mxu1 }
  0xeb   :  { %v578_v14 = vadd.f32 %v576_v3, %v574_v50  ;;  %v295_v17 = vrot.slane %v294_v8, 2  ;;  %v485_v18 = vrot.slane %v484_v9, 2  ;;  %v324_v19 = vrot.slane %v323_v13, 4 }
  0xec   :  { %v290_v15 = vrot.slane %v289_v6, 1  ;;  %v480_v16 = vrot.slane %v479_v7, 1  ;;  %280 = vst.msk [vmem:[#allocation2 + $0x1] ss:$4 sm:$0x3] %vm899_vm1, %v277_v11  ;;  %v322_v21 = vmul.f32 %v159_v51, %v879_v42  ;;  %v577_v22 = vmul.f32 %v561_v52, %v879_v42  ;;  %v169_v1 = vpop.f32.mrf.mxu0  ;;  %v571_v2 = vpop.f32.mrf.mxu1 }
  0xed   :  { %470 = vst.msk [vmem:[#allocation2 + $0xa] ss:$4 sm:$0x3] %vm899_vm1, %v467_v12  ;;  %v579_v20 = vrot.slane %v578_v14, 4  ;;  %v296_v25 = vadd.f32 %v295_v17, %v294_v8  ;;  %v486_v26 = vadd.f32 %v485_v18, %v484_v9  ;;  %v325_v27 = vadd.f32 %v324_v19, %v323_v13 }
  0xee   :  { %v330_v29 = vadd.f32 %v322_v21, %v320_v59  ;;  %v585_v30 = vadd.f32 %v577_v22, %v575_v60  ;;  %v291_v31 = vadd.f32 %v290_v15, %v289_v6  ;;  %v481_v32 = vadd.f32 %v480_v16, %v479_v7 }
  0xef   :  { %v580_v28 = vadd.f32 %v579_v20, %v578_v14  ;;  %v297_v33 = vrot.slane %v296_v25, 1  ;;  %v487_v34 = vrot.slane %v486_v26, 1  ;;  %v326_v35 = vrot.slane %v325_v27, 2 }
  0xf0   :  { %v331_v40 = vrot.slane %v330_v29, 4  ;;  %v586_v41 = vrot.slane %v585_v30, 4  ;;  %v357_v49 = vmul.f32 %v163_v4, %v873_v37  ;;  %v611_v50 = vmul.f32 %v565_v5, %v873_v37 }
  0xf1   :  { %v581_v36 = vrot.slane %v580_v28, 2  ;;  %v298_v46 = vadd.f32 %v297_v33, %v296_v25  ;;  %v488_v48 = vadd.f32 %v487_v34, %v486_v26  ;;  %v327_v51 = vadd.f32 %v326_v35, %v325_v27 }
  0xf2   :  { %v332_v53 = vadd.f32 %v331_v40, %v330_v29  ;;  %v587_v54 = vadd.f32 %v586_v41, %v585_v30  ;;  %v359_v57 = vmul.f32 %v167_v44, %v875_v38  ;;  %v613_v58 = vmul.f32 %v569_v45, %v875_v38 }
  0xf3   :  { %v582_v52 = vadd.f32 %v581_v36, %v580_v28  ;;  %v301_v55 = vcombine.low %v291_v31, %v298_v46  ;;  %v491_v56 = vcombine.low %v481_v32, %v488_v48  ;;  %v328_v59 = vrot.slane %v327_v51, 1 }
  0xf4   :  { %v333_v47 = vrot.slane %v332_v53, 2  ;;  %v588_v61 = vrot.slane %v587_v54, 2  ;;  %v361_v0 = vadd.f32 %v359_v57, %v357_v49  ;;  %v615_v37 = vadd.f32 %v613_v58, %v611_v50 }
  0xf5   :  { %v583_v60 = vrot.slane %v582_v52, 1  ;;  %v308_v62 = vrot.slane %v301_v55, %v889_v10  ;;  %v498_v63 = vrot.slane %v491_v56, %v889_v10  ;;  %v358_v5 = vmul.f32 %v165_v23, %v877_v39 }
  0xf6   :  { %v334_v3 = vadd.f32 %v333_v47, %v332_v53  ;;  %v589_v4 = vadd.f32 %v588_v61, %v587_v54  ;;  %v612_v6 = vmul.f32 %v567_v24, %v877_v39  ;;  %v362_v8 = vrot.slane %v361_v0, 4 }
  0xf7   :  { %v315_v38 = vrot.slane %v308_v62, %v889_v10  ;;  %v505_v7 = vrot.slane %v498_v63, %v889_v10  ;;  %v616_v9 = vrot.slane %v615_v37, 4  ;;  %v360_v13 = vmul.f32 %v169_v1, %v879_v42 }
  0xf8   :  { %v335_v11 = vrot.slane %v334_v3, 1  ;;  %v590_v12 = vrot.slane %v589_v4, 1  ;;  %v614_v14 = vmul.f32 %v571_v2, %v879_v42  ;;  %v329_v15 = vadd.f32 %v328_v59, %v327_v51 }
  0xf9   :  { %318 = vst.msk [vmem:[#allocation2 + $0x2] ss:$4 sm:$0x3] %vm899_vm1, %v315_v38  ;;  %508 = vst.msk [vmem:[#allocation2 + $0xb] ss:$4 sm:$0x3] %vm899_vm1, %v505_v7  ;;  %v584_v39 = vadd.f32 %v583_v60, %v582_v52  ;;  %v363_v16 = vadd.f32 %v362_v8, %v361_v0  ;;  %v617_v17 = vadd.f32 %v616_v9, %v615_v37 }
  0xfa   :  { %v336_v18 = vadd.f32 %v335_v11, %v334_v3  ;;  %v591_v19 = vadd.f32 %v590_v12, %v589_v4  ;;  %v368_v20 = vadd.f32 %v360_v13, %v358_v5  ;;  %v622_v21 = vadd.f32 %v614_v14, %v612_v6 }
  0xfb   :  { %v364_v22 = vrot.slane %v363_v16, 2  ;;  %v618_v23 = vrot.slane %v617_v17, 2 }
  0xfc   :  { %v339_v24 = vcombine.low %v329_v15, %v336_v18  ;;  %v594_v25 = vcombine.low %v584_v39, %v591_v19  ;;  %v369_v26 = vrot.slane %v368_v20, 4  ;;  %v623_v42 = vrot.slane %v622_v21, 4 }
  0xfd   :  { %v365_v27 = vadd.f32 %v364_v22, %v363_v16  ;;  %v619_v28 = vadd.f32 %v618_v23, %v617_v17 }
  0xfe   :  { %v346_v29 = vrot.slane %v339_v24, %v889_v10  ;;  %v370_v30 = vadd.f32 %v369_v26, %v368_v20  ;;  %v624_v31 = vadd.f32 %v623_v42, %v622_v21  ;;  %v601_v32 = vrot.slane %v594_v25, %v889_v10 }
  0xff   :  { %v366_v40 = vrot.slane %v365_v27, 1  ;;  %v620_v41 = vrot.slane %v619_v28, 1 }
 0x100   :  { %v353_v33 = vrot.slane %v346_v29, %v889_v10  ;;  %v371_v34 = vrot.slane %v370_v30, 2  ;;  %v625_v35 = vrot.slane %v624_v31, 2  ;;  %v608_v36 = vrot.slane %v601_v32, %v889_v10 }
 0x101   :  { %v367_v49 = vadd.f32 %v366_v40, %v365_v27  ;;  %v621_v50 = vadd.f32 %v620_v41, %v619_v28 }
 0x102   :  { %356 = vst.msk [vmem:[#allocation2 + $0x3] ss:$4 sm:$0x3] %vm899_vm1, %v353_v33  ;;  %v372_v44 = vadd.f32 %v371_v34, %v370_v30  ;;  %v626_v45 = vadd.f32 %v625_v35, %v624_v31  ;;  %610 = vst.msk [vmem:[#allocation4] sm:$0x3] %vm899_vm1, %v608_v36 }
 0x104   :  { %v373_v46 = vrot.slane %v372_v44, 1  ;;  %v627_v48 = vrot.slane %v626_v45, 1 }
 0x106   :  { %v374_v51 = vadd.f32 %v373_v46, %v372_v44  ;;  %v628_v52 = vadd.f32 %v627_v48, %v626_v45 }
 0x108   :  { %v377_v53 = vcombine.low %v367_v49, %v374_v51  ;;  %v631_v54 = vcombine.low %v621_v50, %v628_v52 }
 0x10a   :  { %v384_v55 = vrot.slane %v377_v53, %v889_v10  ;;  %v638_v56 = vrot.slane %v631_v54, %v889_v10 }
 0x10c   :  { %v391_v57 = vrot.slane %v384_v55, %v889_v10  ;;  %v645_v58 = vrot.slane %v638_v56, %v889_v10 }
 0x10e   :  { %394 = vst.msk [vmem:[#allocation2 + $0x8] ss:$4 sm:$0x3] %vm899_vm1, %v391_v57  ;;  %648 = vst.msk [vmem:[#allocation4 + $0x2] sm:$0x3] %vm899_vm1, %v645_v58 }
 0x10f   :  { %720 = shalt.err (!%p717_p4)
}
 0x110   :  { %s757_s16 = smov 128   ;;  %s758_s17 = smov 8  }
 0x111   :  { %660 = dma.vmem_to_hbm [thread:$0]  %s655_s3, 256, %s977_s4, [#allocation3], %s757_s16, %s757_s16, %s758_s17  }
 0x112   :  { %s729_s20 = scalar_lea.vmem %s667_s14, 64  ;;  %p734_p6 = scmp.lt.s32.totalorder %s667_s14, %s667_s14 }
 0x113   :  { %p730_p5 = scmp.ne.s32.totalorder %s667_s14, %s729_s20  ;;  %p735_p7 = scmp.lt.s32.totalorder %s729_s20, %s729_s20 }
 0x115   :  { %p736_p8 = por %p735_p7, %p734_p6 }
 0x117   :  { %p737_p9 = pnand %p736_p8, %p730_p5 }
 0x119   :  { %740 = shalt.err (!%p737_p9)
}
 0x11a   :  { %s759_s21 = smov 32   ;;  %s760_s22 = smov 2  }
 0x11b   :  { %672 = dma.vmem_to_hbm [thread:$0]  %s667_s14, 64, %s978_s5, [#allocation5], %s759_s21, %s759_s21, %s760_s22  }
 0x11c   :  { %749 = dma.done.wait [#allocation3], 256  }
 0x11d   :  { %750 = vsyncadd [#allocation3], 4294967040 }
 0x11e   :  { %751 = dma.done.wait [#allocation5], 64  }
 0x11f   :  { %752 = vsyncadd [#allocation5], 4294967232 }
 0x120   :  { %679 = vsyncpa [#allocation3], 1 }
 0x121   :  { %680 = vsyncpa [#allocation5], 1 }

</bundles_post_ra>
